<compile_context>
chip_gen: v5e
topology: v5e:2x2
jax: 0.10.0
libtpu: 0.0.40
codegen_flags: <defaults>
</compile_context>

<pallas_src>
import functools

import jax
import jax.numpy as jnp
from jax.experimental import pallas as pl
from jax.experimental.pallas import tpu as pltpu


def _deconv_matmul_kernel(x_ref, w_ref, b_ref, o_ref):
    # x_ref: (TM, K), w_ref: (K, TN), b_ref: (1, TN) f32, o_ref: (TM, TN)
    acc = jnp.dot(x_ref[...], w_ref[...], preferred_element_type=jnp.float32)
    o_ref[...] = (acc + b_ref[...]).astype(o_ref.dtype)


def _round_up(x, m):
    return ((x + m - 1) // m) * m


# Conservative budget so the double-buffered working set fits every chip,
# including v7x (64 MiB physical VMEM).
_VMEM_BUDGET = 36 * 1024 * 1024
# Cap on the (double-buffered) resident weight slab before we start blocking
# the output columns.
_WEIGHT_SLAB_CAP = 8 * 1024 * 1024


def _choose_tiles(m_rows, k_dim, n_cols, in_bytes, out_bytes, tm=None, tn=None):
    """Pick row/column tiles whose double-buffered working set fits VMEM."""
    if tn is None:
        if 2 * k_dim * n_cols * in_bytes <= _WEIGHT_SLAB_CAP:
            tn = n_cols                       # whole weight resident, fetched once
        else:
            tn = (_WEIGHT_SLAB_CAP // (2 * k_dim * in_bytes)) // 128 * 128
            tn = int(max(128, min(tn, n_cols)))
    const = 2 * (k_dim * tn * in_bytes + tn * 4)          # weight + bias buffers
    if tm is None:
        tm = 8
        for cand in (2048, 1024, 512, 256, 128, 64, 32, 16, 8):
            if const + 2 * cand * (k_dim * in_bytes + tn * out_bytes) <= _VMEM_BUDGET:
                tm = cand
                break
    # Sublane alignment; never exceed the 8-aligned problem size so the only
    # ragged block is the standard masked last block.
    cap = max(8, (m_rows // 8) * 8)
    tm = int(max(8, min(_round_up(tm, 8), cap)))
    wset = const + 2 * tm * (k_dim * in_bytes + tn * out_bytes)
    return tm, tn, wset


@functools.partial(jax.jit,
                   static_argnames=("compute_dtype", "data_format", "tm", "tn"))
def single_deconv3d_block(x, weight, bias, *, compute_dtype=None,
                          data_format="NCDHW", tm=None, tn=None):
    """ConvTranspose3d(kernel=2, stride=2, padding=0) forward.

    x      : (N, Cin, D, H, W) if data_format == "NCDHW" (PyTorch layout)
             (N, D, H, W, Cin) if data_format == "NDHWC" (no layout transposes)
    weight : (Cin, Cout, 2, 2, 2)   -- PyTorch ConvTranspose3d weight layout
    bias   : (Cout,)
    compute_dtype : optional matmul operand dtype (jnp.bfloat16 recommended on
                    v6e/v7x); accumulation is always f32.
    returns: (N, Cout, 2D, 2H, 2W) or (N, 2D, 2H, 2W, Cout) respectively.
    """
    if data_format == "NCDHW":
        N, Cin, D, H, W = x.shape
        x_ndhwc = jnp.transpose(x, (0, 2, 3, 4, 1))
    elif data_format == "NDHWC":
        N, D, H, W, Cin = x.shape
        x_ndhwc = x
    else:
        raise ValueError(f"unknown data_format: {data_format}")

    Cout = weight.shape[1]
    K8 = 8 * Cout
    M = N * D * H * W

    in_dtype = x.dtype
    cdt = in_dtype if compute_dtype is None else compute_dtype

    # ---- layout glue (plain JAX; reshapes below are row-major bitcasts) ----
    x_flat = x_ndhwc.reshape(M, Cin).astype(cdt)
    # weight -> (Cin, kd, kh, kw, Cout) -> (Cin, 8*Cout); co is the fastest axis
    w_mat = jnp.transpose(weight, (0, 2, 3, 4, 1)).reshape(Cin, K8)
    # bias replicated over the 8 kernel offsets; epilogue add stays in f32
    b_row = jnp.tile(bias.astype(jnp.float32), 8)[None, :]          # (1, K8)

    # Lane-dense output packing: if 8*Cout < 128 the output stores would be
    # masked (vst.msk).  Pack r input rows per output row via a block-diagonal
    # weight so the kernel output row width is exactly 128 lanes.
    r = 1
    if K8 < 128 and 128 % K8 == 0 and M % (128 // K8) == 0:
        r = 128 // K8
    Kdim = r * Cin
    Ncols = r * K8
    M_rows = M // r
    if r > 1:
        x_flat = x_flat.reshape(M_rows, Kdim)                        # bitcast
        w_mat = jnp.kron(jnp.eye(r, dtype=w_mat.dtype), w_mat)       # (r*Cin, 128)
        b_row = jnp.tile(b_row, (1, r))                              # (1, 128)
    w_mat = w_mat.astype(cdt)

    in_bytes = jnp.dtype(cdt).itemsize
    out_bytes = jnp.dtype(in_dtype).itemsize
    tm, tn, wset = _choose_tiles(M_rows, Kdim, Ncols, in_bytes, out_bytes, tm, tn)

    nj = pl.cdiv(Ncols, tn)     # column blocks (weight streamed once per block)
    ni = pl.cdiv(M_rows, tm)    # row blocks (ragged last block handled by Pallas)
    grid = (nj, ni)

    cost = pl.CostEstimate(
        flops=2 * M * Cin * K8,
        transcendentals=0,
        bytes_accessed=(nj * M * Cin * in_bytes + Kdim * Ncols * in_bytes
                        + M * K8 * out_bytes + Ncols * 4),
    )

    y_flat = pl.pallas_call(
        _deconv_matmul_kernel,
        out_shape=jax.ShapeDtypeStruct((M_rows, Ncols), in_dtype),
        grid_spec=pltpu.PrefetchScalarGridSpec(
            num_scalar_prefetch=0,
            grid=grid,
            in_specs=[
                # activations: stream over the inner (row) axis
                pl.BlockSpec((tm, Kdim), lambda j, i: (i, 0)),
                # weight slab: constant over the inner axis -> fetched once per j
                pl.BlockSpec((Kdim, tn), lambda j, i: (0, j)),
                pl.BlockSpec((1, tn), lambda j, i: (0, j)),
            ],
            out_specs=pl.BlockSpec((tm, tn), lambda j, i: (i, j)),
        ),
        compiler_params=pltpu.CompilerParams(
            dimension_semantics=("arbitrary", "parallel"),
            vmem_limit_bytes=int(min(max(wset + (8 << 20), 32 << 20), 48 << 20)),
        ),
        cost_estimate=cost,
    )(x_flat, w_mat, b_row)

    # ---- scatter the 8 kernel offsets into the upsampled grid (layout glue) ----
    y = y_flat.reshape(N, D, H, W, 2, 2, 2, Cout)
    if data_format == "NCDHW":
        # -> (N, Cout, D, kd, H, kh, W, kw) -> (N, Cout, 2D, 2H, 2W)
        y = jnp.transpose(y, (0, 7, 1, 4, 2, 5, 3, 6)).reshape(
            N, Cout, 2 * D, 2 * H, 2 * W)
    else:
        # -> (N, D, kd, H, kh, W, kw, Cout) -> (N, 2D, 2H, 2W, Cout)
        y = jnp.transpose(y, (0, 1, 4, 2, 5, 3, 6, 7)).reshape(
            N, 2 * D, 2 * H, 2 * W, Cout)
    return y


def _reference(x, weight, bias):
    """Independent XLA reference (direct einsum form of the transposed conv)."""
    N, Cin, D, H, W = x.shape
    Cout = weight.shape[1]
    y = jnp.einsum("ncdhw,coxyz->nodxhywz", x, weight)
    y = y.reshape(N, Cout, 2 * D, 2 * H, 2 * W)
    return y + bias[None, :, None, None, None]


if __name__ == "__main__":
    key = jax.random.PRNGKey(0)
    k_x, k_w, k_b, k_x2, k_w2, k_b2 = jax.random.split(key, 6)

    # Small decoder block: Cin=4 -> Cout=8, spatial 8^3 (matches the module's
    # kernel=2, stride=2 upsampling; exercises the lane-dense packing path).
    N, Cin, Cout = 2, 4, 8
    D = H = W = 8
    x = jax.random.normal(k_x, (N, Cin, D, H, W), dtype=jnp.float32)
    fan = Cin * 2 * 2 * 2
    weight = jax.random.normal(k_w, (Cin, Cout, 2, 2, 2), dtype=jnp.float32) / jnp.sqrt(fan)
    bias = jax.random.normal(k_b, (Cout,), dtype=jnp.float32) * 0.1

    ref = _reference(x, weight, bias)

    # f32 path, PyTorch NCDHW layout (matches nn.ConvTranspose3d forward).
    out = jax.block_until_ready(single_deconv3d_block(x, weight, bias))
    assert out.shape == (N, Cout, 2 * D, 2 * H, 2 * W), out.shape
    assert jnp.allclose(out, ref, atol=1e-5, rtol=1e-5), "NCDHW f32 mismatch"

    # Channels-last path (no NCDHW transposes; preferred for end-to-end NDHWC models).
    x_cl = jnp.transpose(x, (0, 2, 3, 4, 1))
    out_cl = jax.block_until_ready(
        single_deconv3d_block(x_cl, weight, bias, data_format="NDHWC"))
    assert jnp.allclose(out_cl, jnp.transpose(ref, (0, 2, 3, 4, 1)),
                        atol=1e-5, rtol=1e-5), "NDHWC mismatch"

    # bf16 compute path (recommended on v6e/v7x; f32 accumulation inside the kernel).
    out_bf16 = jax.block_until_ready(
        single_deconv3d_block(x, weight, bias, compute_dtype=jnp.bfloat16))
    assert jnp.allclose(out_bf16, ref, atol=5e-2, rtol=5e-2), "bf16 mismatch"

    # Large-channel block (Cin=Cout=512, spatial 3^3): exercises the
    # column-blocked weight streaming and the ragged (masked) last row block.
    N2, Cin2, Cout2 = 1, 512, 512
    D2 = H2 = W2 = 3
    x2 = jax.random.normal(k_x2, (N2, Cin2, D2, H2, W2), dtype=jnp.float32)
    w2 = jax.random.normal(k_w2, (Cin2, Cout2, 2, 2, 2), dtype=jnp.float32) / jnp.sqrt(Cin2 * 8)
    b2 = jax.random.normal(k_b2, (Cout2,), dtype=jnp.float32) * 0.1
    ref2 = _reference(x2, w2, b2)
    out2 = jax.block_until_ready(single_deconv3d_block(x2, w2, b2))
    assert out2.shape == (N2, Cout2, 2 * D2, 2 * H2, 2 * W2), out2.shape
    assert jnp.allclose(out2, ref2, atol=2e-2, rtol=2e-2), "large-channel mismatch"

    print("KERNEL_OK")
</pallas_src>

<mosaic_0001>
module attributes {stable_mosaic.version = 11 : i64} {
  func.func @_deconv_matmul_kernel(%arg0: i32, %arg1: i32, %arg2: memref<512x8xf32, #tpu.memory_space<vmem>>, %arg3: memref<8x128xf32, #tpu.memory_space<vmem>>, %arg4: memref<1x128xf32, #tpu.memory_space<vmem>>, %arg5: memref<512x128xf32, #tpu.memory_space<vmem>>) attributes {dimension_semantics = [#tpu.dimension_semantics<arbitrary>, #tpu.dimension_semantics<parallel>], iteration_bounds = array<i64: 1, 1>, scalar_prefetch = 0 : i64, scratch_operands = 0 : i64, tpu.core_type = #tpu.core_type<tc>, window_params = [{transform_indices = @transform_0, window_bounds = array<i64: 512, 8>}, {transform_indices = @transform_1, window_bounds = array<i64: 8, 128>}, {transform_indices = @transform_2, window_bounds = array<i64: 1, 128>}, {transform_indices = @transform_3, window_bounds = array<i64: 512, 128>}]} {
    %c0 = arith.constant 0 : index
    %c0_0 = arith.constant 0 : index
    %0 = vector.load %arg2[%c0, %c0_0] : memref<512x8xf32, #tpu.memory_space<vmem>>, vector<512x8xf32>
    %c0_1 = arith.constant 0 : index
    %c0_2 = arith.constant 0 : index
    %1 = vector.load %arg3[%c0_1, %c0_2] : memref<8x128xf32, #tpu.memory_space<vmem>>, vector<8x128xf32>
    %cst = arith.constant dense<0.000000e+00> : vector<512x128xf32>
    %2 = tpu.matmul %0, %1, %cst {dimension_numbers = #tpu.dot_dimension_numbers<[1], [0], [0], [1], [0, 0, 1, 1], [], []>} : vector<512x8xf32>, vector<8x128xf32>, vector<512x128xf32> -> vector<512x128xf32>
    %c0_3 = arith.constant 0 : index
    %c0_4 = arith.constant 0 : index
    %3 = vector.load %arg4[%c0_3, %c0_4] : memref<1x128xf32, #tpu.memory_space<vmem>>, vector<1x128xf32>
    %4 = vector.broadcast %3 : vector<1x128xf32> to vector<512x128xf32>
    %5 = arith.addf %2, %4 : vector<512x128xf32>
    %c0_5 = arith.constant 0 : index
    %c0_6 = arith.constant 0 : index
    %6 = vector.load %arg5[%c0_5, %c0_6] : memref<512x128xf32, #tpu.memory_space<vmem>>, vector<512x128xf32>
    tpu.vector_store %arg5[%c0_5, %c0_6], %5 {strides = array<i32>} : memref<512x128xf32, #tpu.memory_space<vmem>>, vector<512x128xf32>,
    return
  }
  func.func @transform_0(%arg0: i32, %arg1: i32) -> (i32, i32) {
    %c0_i32 = arith.constant 0 : i32
    %c0_i32_0 = arith.constant 0 : i32
    return %arg1, %c0_i32 : i32, i32
  }
  func.func @transform_1(%arg0: i32, %arg1: i32) -> (i32, i32) {
    %c0_i32 = arith.constant 0 : i32
    %c0_i32_0 = arith.constant 0 : i32
    return %c0_i32, %arg0 : i32, i32
  }
  func.func @transform_2(%arg0: i32, %arg1: i32) -> (i32, i32) {
    %c0_i32 = arith.constant 0 : i32
    %c0_i32_0 = arith.constant 0 : i32
    return %c0_i32, %arg0 : i32, i32
  }
  func.func @transform_3(%arg0: i32, %arg1: i32) -> (i32, i32) {
    %c0_i32 = arith.constant 0 : i32
    return %arg1, %arg0 : i32, i32
  }
}

</mosaic_0001>

<bundles_post_ra>
// kernel: tile.12
= control target key start
LH: loop header
LB: loop body
LE: loop exit
PB: predicated region body
PF: predicated region fallthrough
CT: control target
= control target key end

     0   :  { %2 = vsyncpa [#allocation1], 0  ;;  %s48_s8 = smov [#allocation0]   ;;  %s65_s0 = inlined_call_operand.hbm [shape: f32[8], index: 0, kind: input, shape index: {}]   ;;  %s66_s1 = inlined_call_operand.vmem [shape: f32[8,8], index: 1, kind: output, shape index: {}]  }
   0x1   :  { %s8_s0 = sshll.u32 %s65_s0, 4  ;;  %s10_s9 = sshll.u32 %s48_s8, 4  ;;  %s9_s0 = int_to_ptr.hbm [resolvable:$true] %s8_s0  ;;  %s11_s9 = int_to_ptr.vmem [resolvable:$true] %s10_s9 }
   0x2   :  { %13 = dma.hbm_to_vmem [thread:$0]  %s9_s0, 16, %s11_s9, [#allocation1]  }
   0x3   :  { %46 = dma.done.wait [#allocation1], 16  }
   0x4   :  { %47 = vsyncadd [#allocation1], 4294967280  ;;  %v18_v0 = vld [vmem:[#allocation0] ss:$0 sm:$0xff] }
   0x5   :  { %19 = vst [vmem:[%s66_s1] sm:$0xff] %v18_v0 }
   0x6   :  { %20 = vsyncpa [#allocation1], 1 }

// kernel: mul.4
= control target key start
LH: loop header
LB: loop body
LE: loop exit
PB: predicated region body
PF: predicated region fallthrough
CT: control target
= control target key end

     0   :  { %2 = vsyncpa [#allocation1], 0  ;;  %s260_s8 = smov [#allocation0]   ;;  %s308_s0 = inlined_call_operand.hbm [shape: f32[4,2,2,2,8], index: 0, kind: input, shape index: {}]   ;;  %s309_s1 = inlined_call_operand.vmem [shape: f32[4,64], index: 1, kind: output, shape index: {}]  }
   0x1   :  { %s6_s0 = sshll.u32 %s308_s0, 4  ;;  %s8_s9 = sshll.u32 %s260_s8, 4  ;;  %s7_s0 = int_to_ptr.hbm [resolvable:$true] %s6_s0  ;;  %s9_s9 = int_to_ptr.vmem [resolvable:$true] %s8_s9 }
   0x2   :  { %11 = dma.hbm_to_vmem [thread:$0]  %s7_s0, 512, %s9_s9, [#allocation1]  }
   0x3   :  { %258 = dma.done.wait [#allocation1], 512  }
   0x4   :  { %259 = vsyncadd [#allocation1], 4294966784  ;;  %v17_v0 = vld [vmem:[#allocation0 + $0x1e] sm:$0x3]  ;;  %v33_v1 = vld [vmem:[#allocation0 + $0x16] sm:$0x3] }
   0x5   :  { %v49_v2 = vld [vmem:[#allocation0 + $0xe] sm:$0x3]  ;;  %19 = vst [vmem:[#allocation3 + $0x78] sm:$0x3] %v17_v0  ;;  %v65_v3 = vld [vmem:[#allocation0 + $0x6] sm:$0x3] }
   0x6   :  { %35 = vst [vmem:[#allocation3 + $0x58] sm:$0x3] %v33_v1  ;;  %v21_v4 = vld [vmem:[#allocation0 + $0x1c] sm:$0x3]  ;;  %v37_v5 = vld [vmem:[#allocation0 + $0x14] sm:$0x3] }
   0x7   :  { %51 = vst [vmem:[#allocation3 + $0x38] sm:$0x3] %v49_v2  ;;  %v53_v6 = vld [vmem:[#allocation0 + $0xc] sm:$0x3]  ;;  %vm81_vm0 = vcmask 1041409   ;;  %vm85_vm1 = vcmask 1042434  }
   0x8   :  { %67 = vst [vmem:[#allocation3 + $0x18] sm:$0x3] %v65_v3  ;;  %v69_v7 = vld [vmem:[#allocation0 + $0x4] sm:$0x3]  ;;  %vm89_vm2 = vcmask 1043459   ;;  %s261_s10 = smov 56  }
   0x9   :  { %23 = vst [vmem:[#allocation3 + $0x70] sm:$0x3] %v21_v4  ;;  %v29_v8 = vld [vmem:[#allocation0 + $0x18] sm:$0x3]  ;;  %v45_v9 = vld [vmem:[#allocation0 + $0x10] sm:$0x3] }
   0xa   :  { %39 = vst [vmem:[#allocation3 + $0x50] sm:$0x3] %v37_v5  ;;  %v61_v10 = vld [vmem:[#allocation0 + $0x8] sm:$0x3]  ;;  %v76_v11 = vld [vmem:[#allocation0] sm:$0x3] }
   0xb   :  { %55 = vst [vmem:[#allocation3 + $0x30] sm:$0x3] %v53_v6  ;;  %v25_v12 = vld [vmem:[#allocation0 + $0x1a] sm:$0x3]  ;;  %v41_v15 = vld [vmem:[#allocation0 + $0x12] sm:$0x3] }
   0xc   :  { %71 = vst [vmem:[#allocation3 + $0x10] sm:$0x3] %v69_v7  ;;  %v104_v14 = vld [vmem:[#allocation3 + $0x76] sm:$0x8]   ;;  %v57_v18 = vld [vmem:[#allocation0 + $0xa] sm:$0x3] }
   0xd   :  { %v100_v13 = vld [vmem:[#allocation3 + $0x57] sm:$0x4]   ;;  %31 = vst [vmem:[#allocation3 + $0x60] sm:$0x3] %v29_v8  ;;  %v118_v22 = vld [vmem:[#allocation3 + $0x56] sm:$0x4]  }
   0xe   :  { %v96_v16 = vld [vmem:[#allocation3 + $0x38] sm:$0x2]   ;;  %v114_v17 = vld [vmem:[#allocation3 + $0x37] sm:$0x2]   ;;  %47 = vst [vmem:[#allocation3 + $0x40] sm:$0x3] %v45_v9 }
   0xf   :  { %v94_v19 = vld [vmem:[#allocation3 + $0x19] sm:$0x1]   ;;  %v112_v20 = vld [vmem:[#allocation3 + $0x18] sm:$0x1]   ;;  %63 = vst [vmem:[#allocation3 + $0x20] sm:$0x3] %v61_v10 }
  0x10   :  { %v98_v21 = vsel %vm81_vm0, %v96_v16, %v94_v19  ;;  %77 = vst [vmem:[#allocation3] sm:$0x3] %v76_v11  ;;  %v73_v23 = vld [vmem:[#allocation0 + $0x2] sm:$0x3]  ;;  %v140_v26 = vld [vmem:[#allocation3 + $0x6e] sm:$0x8]   ;;  %v116_v29 = vsel %vm81_vm0, %v114_v17, %v112_v20 }
  0x11   :  { %v102_v24 = vsel %vm85_vm1, %v100_v13, %v98_v21  ;;  %v136_v25 = vld [vmem:[#allocation3 + $0x4f] sm:$0x4]   ;;  %27 = vst [vmem:[#allocation3 + $0x68] sm:$0x3] %v25_v12  ;;  %v120_v35 = vsel %vm85_vm1, %v118_v22, %v116_v29  ;;  %v122_v36 = vld [vmem:[#allocation3 + $0x75] sm:$0x8]  }
  0x12   :  { %v106_v27 = vsel %vm89_vm2, %v104_v14, %v102_v24  ;;  %v132_v28 = vld [vmem:[#allocation3 + $0x30] sm:$0x2]   ;;  %v150_v30 = vld [vmem:[#allocation3 + $0x2f] sm:$0x2]   ;;  %43 = vst [vmem:[#allocation3 + $0x48] sm:$0x3] %v41_v15  ;;  %v124_v46 = vsel %vm89_vm2, %v122_v36, %v120_v35 }
  0x13   :  { %107 = vrot.lane.b32.xlu0 %v106_v27, %s261_s10  ;;  %v130_v31 = vld [vmem:[#allocation3 + $0x11] sm:$0x1]   ;;  %v148_v32 = vld [vmem:[#allocation3 + $0x10] sm:$0x1]   ;;  %59 = vst [vmem:[#allocation3 + $0x28] sm:$0x3] %v57_v18 }
  0x14   :  { %v134_v33 = vsel %vm81_vm0, %v132_v28, %v130_v31  ;;  %75 = vst [vmem:[#allocation3 + $0x8] sm:$0x3] %v73_v23  ;;  %v154_v37 = vld [vmem:[#allocation3 + $0x4e] sm:$0x4]   ;;  %v152_v39 = vsel %vm81_vm0, %v150_v30, %v148_v32  ;;  %v88_v42 = vld [vmem:[#allocation3 + $0x5d] sm:$0x8]  }
  0x15   :  { %v138_v34 = vsel %vm85_vm1, %v136_v25, %v134_v33  ;;  %v84_v41 = vld [vmem:[#allocation3 + $0x3e] sm:$0x4]   ;;  %s262_s11 = smov 40   ;;  %vm91_vm3 = vcmask 64512   ;;  %v156_v48 = vsel %vm85_vm1, %v154_v37, %v152_v39  ;;  %v158_v49 = vld [vmem:[#allocation3 + $0x6d] sm:$0x8]  }
  0x16   :  { %v142_v38 = vsel %vm89_vm2, %v140_v26, %v138_v34  ;;  %v80_v40 = vld [vmem:[#allocation3 + $0x1f] sm:$0x2]   ;;  %v204_v45 = vld [vmem:[#allocation3 + $0x20] sm:$0x2]   ;;  %s263_s12 = smov 48   ;;  %v160_v60 = vsel %vm89_vm2, %v158_v49, %v156_v48  ;;  %s264_s13 = smov 32  }
  0x17   :  { %143 = vrot.lane.b32.xlu1 %v142_v38, %s262_s11  ;;  %v78_v43 = vld [vmem:[#allocation3] sm:$0x1]   ;;  %v202_v44 = vld [vmem:[#allocation3 + $0x1] sm:$0x1]   ;;  %s265_s14 = smov 24   ;;  %s266_s15 = smov 8  }
  0x18   :  { %v82_v47 = vsel %vm81_vm0, %v80_v40, %v78_v43  ;;  %v208_v50 = vld [vmem:[#allocation3 + $0x3f] sm:$0x4]   ;;  %v176_v51 = vld [vmem:[#allocation3 + $0x66] sm:$0x8]   ;;  %v206_v53 = vsel %vm81_vm0, %v204_v45, %v202_v44  ;;  %v194_v6 = vld [vmem:[#allocation3 + $0x65] sm:$0x8]  }
  0x19   :  { %v86_v52 = vsel %vm85_vm1, %v84_v41, %v82_v47  ;;  %v172_v55 = vld [vmem:[#allocation3 + $0x47] sm:$0x4]   ;;  %v210_v62 = vsel %vm85_vm1, %v208_v50, %v206_v53  ;;  %v212_v63 = vld [vmem:[#allocation3 + $0x5e] sm:$0x8]   ;;  %v190_v3 = vld [vmem:[#allocation3 + $0x46] sm:$0x4]  }
  0x1a   :  { %v168_v54 = vld [vmem:[#allocation3 + $0x28] sm:$0x2]   ;;  %v186_v56 = vld [vmem:[#allocation3 + $0x27] sm:$0x2]   ;;  %v90_v57 = vsel %vm89_vm2, %v88_v42, %v86_v52  ;;  %v214_v4 = vsel %vm89_vm2, %v212_v63, %v210_v62  ;;  %s267_s16 = smov 16   ;;  %vm109_vm4 = vcmask 523712  }
  0x1b   :  { %125 = vrot.lane.b32.xlu0 %v124_v46, %s263_s12  ;;  %v166_v58 = vld [vmem:[#allocation3 + $0x9] sm:$0x1]   ;;  %v184_v59 = vld [vmem:[#allocation3 + $0x8] sm:$0x1]   ;;  %92 = vst.msk [vmem:[#allocation2] sm:$0xf] %vm91_vm3, %v90_v57  }
  0x1c   :  { %v170_v61 = vsel %vm81_vm0, %v168_v54, %v166_v58  ;;  %v188_v2 = vsel %vm81_vm0, %v186_v56, %v184_v59  ;;  %vm127_vm5 = vcmask 458112   ;;  %vm145_vm6 = vcmask 392512  }
  0x1d   :  { %v174_v0 = vsel %vm85_vm1, %v172_v55, %v170_v61  ;;  %v192_v5 = vsel %vm85_vm1, %v190_v3, %v188_v2  ;;  %vm163_vm7 = vcmask 326912   ;;  %vm181_vm8 = vcmask 261312  }
  0x1e   :  { %v178_v1 = vsel %vm89_vm2, %v176_v51, %v174_v0  ;;  %v196_v7 = vsel %vm89_vm2, %v194_v6, %v192_v5  ;;  %vm199_vm9 = vcmask 195712   ;;  %vm217_vm10 = vcmask 130112  }
  0x1f   :  { %161 = vrot.lane.b32.xlu1 %v160_v60, %s264_s13  ;;  %179 = vrot.lane.b32.xlu2 %v178_v1, %s265_s14 }
  0x23   :  { %215 = vrot.lane.b32.xlu0 %v214_v4, %s266_s15 }
  0x27   :  { %197 = vrot.lane.b32.xlu2 %v196_v7, %s267_s16 }
  0x79   :  { %v180_v8 = vpop.permute.xlu2 %179  }
  0x81   :  { %v198_v9 = vpop.permute.xlu2 %197  }
  0x85   :  { %v108_v10 = vpop.permute.xlu0 %107  }
  0x86   :  { %110 = vst.msk [vmem:[#allocation2] sm:$0xf] %vm109_vm4, %v108_v10  }
  0x89   :  { %v144_v11 = vpop.permute.xlu1 %143  }
  0x8d   :  { %v126_v12 = vpop.permute.xlu0 %125  }
  0x8e   :  { %128 = vst.msk [vmem:[#allocation2] sm:$0xf] %vm127_vm5, %v126_v12  }
  0x8f   :  { %146 = vst.msk [vmem:[#allocation2] sm:$0xf] %vm145_vm6, %v144_v11  }
  0x91   :  { %v162_v13 = vpop.permute.xlu1 %161  }
  0x92   :  { %164 = vst.msk [vmem:[#allocation2] sm:$0xf] %vm163_vm7, %v162_v13  }
  0x93   :  { %182 = vst.msk [vmem:[#allocation2] sm:$0xf] %vm181_vm8, %v180_v8  }
  0x94   :  { %200 = vst.msk [vmem:[#allocation2] sm:$0xf] %vm199_vm9, %v198_v9  }
  0x95   :  { %v216_v14 = vpop.permute.xlu0 %215  }
  0x96   :  { %218 = vst.msk [vmem:[#allocation2] sm:$0xf] %vm217_vm10, %v216_v14  }
  0x9d   :  { %v221_v15 = vld [vmem:[#allocation2] sm:$0xf] }
  0x9e   :  { %224 = vst [vmem:[%s309_s1] sm:$0xf] %v221_v15 }
  0x9f   :  { %225 = vsyncpa [#allocation1], 1 }

// kernel: single_deconv3d_block.1
= control target key start
LH: loop header
LB: loop body
LE: loop exit
PB: predicated region body
PF: predicated region fallthrough
CT: control target
= control target key end

     0   :  { %vm83_vm0 = vcmask 64512   ;;  %s1161_s1 = inlined_call_operand.vmem [shape: f32[8,128], index: 1, kind: input, shape index: {}]   ;;  %s1162_s0 = inlined_call_operand.vmem [shape: f32[512,8], index: 0, kind: input, shape index: {}]   ;;  %s1163_s2 = inlined_call_operand.vmem [shape: f32[1,128], index: 2, kind: input, shape index: {}]   ;;  %s1164_s3 = inlined_call_operand.vmem [shape: f32[512,128], index: 3, kind: output, shape index: {}]  }
   0x1   :  { %v78_v0 = vld [vmem:[%s1161_s1] sm:$0xff]  ;;  %v47_v5 = vld [vmem:[%s1162_s0 + $0x108] sm:$0xff]  ;;  %v48_v9 = vld [vmem:[%s1162_s0 + $0x110] sm:$0xff] }
   0x2   :  { %v46_v1 = vld [vmem:[%s1162_s0 + $0x100] sm:$0xff]  ;;  %618 = vmatpush.msra.mxu2 %v78_v0  ;;  %619 = vmatpush.msra.mxu3 %v78_v0  ;;  %v63_v6 = vld [vmem:[%s1162_s0 + $0x188] sm:$0xff]  ;;  %v64_v10 = vld [vmem:[%s1162_s0 + $0x190] sm:$0xff] }
   0x3   :  { %v62_v2 = vld [vmem:[%s1162_s0 + $0x180] sm:$0xff]  ;;  %585 = vmatmul.msk.f32.vlgmr.msra.gmra.mxu2 %vm83_vm0, %v46_v1  ;;  %291 = vmatpush.msra.mxu0 %v78_v0  ;;  %v15_v7 = vld [vmem:[%s1162_s0 + $0x8] sm:$0xff]  ;;  %v16_v11 = vld [vmem:[%s1162_s0 + $0x10] sm:$0xff] }
   0x4   :  { %v14_v3 = vld [vmem:[%s1162_s0] sm:$0xff]  ;;  %601 = vmatmul.msk.f32.vlgmr.msra.gmra.mxu3 %vm83_vm0, %v62_v2  ;;  %617 = vmatpush.msra.mxu1 %v78_v0  ;;  %v31_v8 = vld [vmem:[%s1162_s0 + $0x88] sm:$0xff]  ;;  %v32_v12 = vld [vmem:[%s1162_s0 + $0x90] sm:$0xff] }
   0x5   :  { %v30_v4 = vld [vmem:[%s1162_s0 + $0x80] sm:$0xff]  ;;  %553 = vmatmul.msk.f32.vlgmr.msra.gmra.mxu0 %vm83_vm0, %v14_v3  ;;  %v49_v13 = vld [vmem:[%s1162_s0 + $0x118] sm:$0xff]  ;;  %v51_v21 = vld [vmem:[%s1162_s0 + $0x128] sm:$0xff] }
   0x6   :  { %569 = vmatmul.msk.f32.vlgmr.msra.gmra.mxu1 %vm83_vm0, %v30_v4  ;;  %v65_v14 = vld [vmem:[%s1162_s0 + $0x198] sm:$0xff]  ;;  %v50_v17 = vld [vmem:[%s1162_s0 + $0x120] sm:$0xff]  ;;  %v67_v22 = vld [vmem:[%s1162_s0 + $0x1a8] sm:$0xff] }
   0x7   :  { %v17_v15 = vld [vmem:[%s1162_s0 + $0x18] sm:$0xff]  ;;  %v66_v18 = vld [vmem:[%s1162_s0 + $0x1a0] sm:$0xff]  ;;  %v19_v23 = vld [vmem:[%s1162_s0 + $0x28] sm:$0xff] }
   0x8   :  { %v33_v16 = vld [vmem:[%s1162_s0 + $0x98] sm:$0xff]  ;;  %v18_v19 = vld [vmem:[%s1162_s0 + $0x20] sm:$0xff]  ;;  %v35_v24 = vld [vmem:[%s1162_s0 + $0xa8] sm:$0xff] }
   0x9   :  { %v34_v20 = vld [vmem:[%s1162_s0 + $0xa0] sm:$0xff]  ;;  %v52_v25 = vld [vmem:[%s1162_s0 + $0x130] sm:$0xff]  ;;  %v53_v29 = vld [vmem:[%s1162_s0 + $0x138] sm:$0xff] }
   0xa   :  { %v68_v26 = vld [vmem:[%s1162_s0 + $0x1b0] sm:$0xff]  ;;  %v69_v30 = vld [vmem:[%s1162_s0 + $0x1b8] sm:$0xff]  ;;  %v54_v33 = vld [vmem:[%s1162_s0 + $0x140] sm:$0xff] }
   0xb   :  { %586 = vmatmul.msk.f32.gmra.mxu2 %vm83_vm0, %v47_v5  ;;  %v20_v27 = vld [vmem:[%s1162_s0 + $0x30] sm:$0xff]  ;;  %v21_v31 = vld [vmem:[%s1162_s0 + $0x38] sm:$0xff]  ;;  %v70_v34 = vld [vmem:[%s1162_s0 + $0x1c0] sm:$0xff] }
   0xc   :  { %602 = vmatmul.msk.f32.gmra.mxu3 %vm83_vm0, %v63_v6  ;;  %v36_v28 = vld [vmem:[%s1162_s0 + $0xb0] sm:$0xff]  ;;  %v37_v32 = vld [vmem:[%s1162_s0 + $0xb8] sm:$0xff]  ;;  %v22_v35 = vld [vmem:[%s1162_s0 + $0x40] sm:$0xff] }
   0xd   :  { %554 = vmatmul.msk.f32.gmra.mxu0 %vm83_vm0, %v15_v7  ;;  %v38_v36 = vld [vmem:[%s1162_s0 + $0xc0] sm:$0xff]  ;;  %v55_v37 = vld [vmem:[%s1162_s0 + $0x148] sm:$0xff]  ;;  %v56_v41 = vld [vmem:[%s1162_s0 + $0x150] sm:$0xff] }
   0xe   :  { %570 = vmatmul.msk.f32.gmra.mxu1 %vm83_vm0, %v31_v8  ;;  %v71_v38 = vld [vmem:[%s1162_s0 + $0x1c8] sm:$0xff]  ;;  %v72_v42 = vld [vmem:[%s1162_s0 + $0x1d0] sm:$0xff]  ;;  %v57_v45 = vld [vmem:[%s1162_s0 + $0x158] sm:$0xff] }
   0xf   :  { %v23_v39 = vld [vmem:[%s1162_s0 + $0x48] sm:$0xff]  ;;  %v24_v43 = vld [vmem:[%s1162_s0 + $0x50] sm:$0xff]  ;;  %v73_v46 = vld [vmem:[%s1162_s0 + $0x1d8] sm:$0xff] }
  0x10   :  { %v39_v40 = vld [vmem:[%s1162_s0 + $0xc8] sm:$0xff]  ;;  %v40_v44 = vld [vmem:[%s1162_s0 + $0xd0] sm:$0xff]  ;;  %v25_v47 = vld [vmem:[%s1162_s0 + $0x58] sm:$0xff] }
  0x11   :  { %v41_v48 = vld [vmem:[%s1162_s0 + $0xd8] sm:$0xff]  ;;  %v58_v49 = vld [vmem:[%s1162_s0 + $0x160] sm:$0xff]  ;;  %v59_v53 = vld [vmem:[%s1162_s0 + $0x168] sm:$0xff] }
  0x12   :  { %v74_v50 = vld [vmem:[%s1162_s0 + $0x1e0] sm:$0xff]  ;;  %v75_v54 = vld [vmem:[%s1162_s0 + $0x1e8] sm:$0xff]  ;;  %v60_v57 = vld [vmem:[%s1162_s0 + $0x170] sm:$0xff] }
  0x13   :  { %587 = vmatmul.msk.f32.gmra.mxu2 %vm83_vm0, %v48_v9  ;;  %v26_v51 = vld [vmem:[%s1162_s0 + $0x60] sm:$0xff]  ;;  %v27_v55 = vld [vmem:[%s1162_s0 + $0x68] sm:$0xff]  ;;  %v76_v58 = vld [vmem:[%s1162_s0 + $0x1f0] sm:$0xff] }
  0x14   :  { %603 = vmatmul.msk.f32.gmra.mxu3 %vm83_vm0, %v64_v10  ;;  %v42_v52 = vld [vmem:[%s1162_s0 + $0xe0] sm:$0xff]  ;;  %v43_v56 = vld [vmem:[%s1162_s0 + $0xe8] sm:$0xff]  ;;  %v28_v59 = vld [vmem:[%s1162_s0 + $0x70] sm:$0xff] }
  0x15   :  { %555 = vmatmul.msk.f32.gmra.mxu0 %vm83_vm0, %v16_v11  ;;  %v44_v60 = vld [vmem:[%s1162_s0 + $0xf0] sm:$0xff]  ;;  %v61_v61 = vld [vmem:[%s1162_s0 + $0x178] sm:$0xff]  ;;  %v903_v1 = vld [vmem:[%s1163_s2] ss:$0 sm:$0xff] }
  0x16   :  { %571 = vmatmul.msk.f32.gmra.mxu1 %vm83_vm0, %v32_v12  ;;  %v77_v62 = vld [vmem:[%s1162_s0 + $0x1f8] sm:$0xff] }
  0x17   :  { %v29_v63 = vld [vmem:[%s1162_s0 + $0x78] sm:$0xff] }
  0x18   :  { %v45_v0 = vld [vmem:[%s1162_s0 + $0xf8] sm:$0xff] }
  0x1b   :  { %588 = vmatmul.msk.f32.gmra.mxu2 %vm83_vm0, %v49_v13 }
  0x1c   :  { %604 = vmatmul.msk.f32.gmra.mxu3 %vm83_vm0, %v65_v14 }
  0x1d   :  { %556 = vmatmul.msk.f32.gmra.mxu0 %vm83_vm0, %v17_v15 }
  0x1e   :  { %572 = vmatmul.msk.f32.gmra.mxu1 %vm83_vm0, %v33_v16 }
  0x23   :  { %589 = vmatmul.msk.f32.gmra.mxu2 %vm83_vm0, %v50_v17 }
  0x24   :  { %605 = vmatmul.msk.f32.gmra.mxu3 %vm83_vm0, %v66_v18 }
  0x25   :  { %557 = vmatmul.msk.f32.gmra.mxu0 %vm83_vm0, %v18_v19 }
  0x26   :  { %573 = vmatmul.msk.f32.gmra.mxu1 %vm83_vm0, %v34_v20 }
  0x2b   :  { %590 = vmatmul.msk.f32.gmra.mxu2 %vm83_vm0, %v51_v21 }
  0x2c   :  { %606 = vmatmul.msk.f32.gmra.mxu3 %vm83_vm0, %v67_v22 }
  0x2d   :  { %558 = vmatmul.msk.f32.gmra.mxu0 %vm83_vm0, %v19_v23 }
  0x2e   :  { %574 = vmatmul.msk.f32.gmra.mxu1 %vm83_vm0, %v35_v24 }
  0x33   :  { %591 = vmatmul.msk.f32.gmra.mxu2 %vm83_vm0, %v52_v25 }
  0x34   :  { %607 = vmatmul.msk.f32.gmra.mxu3 %vm83_vm0, %v68_v26 }
  0x35   :  { %559 = vmatmul.msk.f32.gmra.mxu0 %vm83_vm0, %v20_v27 }
  0x36   :  { %575 = vmatmul.msk.f32.gmra.mxu1 %vm83_vm0, %v36_v28 }
  0x3b   :  { %592 = vmatmul.msk.f32.gmra.mxu2 %vm83_vm0, %v53_v29 }
  0x3c   :  { %608 = vmatmul.msk.f32.gmra.mxu3 %vm83_vm0, %v69_v30 }
  0x3d   :  { %560 = vmatmul.msk.f32.gmra.mxu0 %vm83_vm0, %v21_v31 }
  0x3e   :  { %576 = vmatmul.msk.f32.gmra.mxu1 %vm83_vm0, %v37_v32 }
  0x43   :  { %593 = vmatmul.msk.f32.gmra.mxu2 %vm83_vm0, %v54_v33 }
  0x44   :  { %609 = vmatmul.msk.f32.gmra.mxu3 %vm83_vm0, %v70_v34 }
  0x45   :  { %561 = vmatmul.msk.f32.gmra.mxu0 %vm83_vm0, %v22_v35 }
  0x46   :  { %577 = vmatmul.msk.f32.gmra.mxu1 %vm83_vm0, %v38_v36 }
  0x4b   :  { %594 = vmatmul.msk.f32.gmra.mxu2 %vm83_vm0, %v55_v37 }
  0x4c   :  { %610 = vmatmul.msk.f32.gmra.mxu3 %vm83_vm0, %v71_v38 }
  0x4d   :  { %562 = vmatmul.msk.f32.gmra.mxu0 %vm83_vm0, %v23_v39 }
  0x4e   :  { %578 = vmatmul.msk.f32.gmra.mxu1 %vm83_vm0, %v39_v40 }
  0x53   :  { %595 = vmatmul.msk.f32.gmra.mxu2 %vm83_vm0, %v56_v41 }
  0x54   :  { %611 = vmatmul.msk.f32.gmra.mxu3 %vm83_vm0, %v72_v42 }
  0x55   :  { %563 = vmatmul.msk.f32.gmra.mxu0 %vm83_vm0, %v24_v43 }
  0x56   :  { %579 = vmatmul.msk.f32.gmra.mxu1 %vm83_vm0, %v40_v44 }
  0x5b   :  { %596 = vmatmul.msk.f32.gmra.mxu2 %vm83_vm0, %v57_v45 }
  0x5c   :  { %612 = vmatmul.msk.f32.gmra.mxu3 %vm83_vm0, %v73_v46 }
  0x5d   :  { %564 = vmatmul.msk.f32.gmra.mxu0 %vm83_vm0, %v25_v47 }
  0x5e   :  { %580 = vmatmul.msk.f32.gmra.mxu1 %vm83_vm0, %v41_v48 }
  0x63   :  { %597 = vmatmul.msk.f32.gmra.mxu2 %vm83_vm0, %v58_v49 }
  0x64   :  { %613 = vmatmul.msk.f32.gmra.mxu3 %vm83_vm0, %v74_v50 }
  0x65   :  { %565 = vmatmul.msk.f32.gmra.mxu0 %vm83_vm0, %v26_v51 }
  0x66   :  { %581 = vmatmul.msk.f32.gmra.mxu1 %vm83_vm0, %v42_v52 }
  0x6b   :  { %598 = vmatmul.msk.f32.gmra.mxu2 %vm83_vm0, %v59_v53 }
  0x6c   :  { %614 = vmatmul.msk.f32.gmra.mxu3 %vm83_vm0, %v75_v54 }
  0x6d   :  { %566 = vmatmul.msk.f32.gmra.mxu0 %vm83_vm0, %v27_v55 }
  0x6e   :  { %582 = vmatmul.msk.f32.gmra.mxu1 %vm83_vm0, %v43_v56 }
  0x73   :  { %599 = vmatmul.msk.f32.gmra.mxu2 %vm83_vm0, %v60_v57 }
  0x74   :  { %615 = vmatmul.msk.f32.gmra.mxu3 %vm83_vm0, %v76_v58 }
  0x75   :  { %567 = vmatmul.msk.f32.gmra.mxu0 %vm83_vm0, %v28_v59 }
  0x76   :  { %583 = vmatmul.msk.f32.gmra.mxu1 %vm83_vm0, %v44_v60 }
  0x7b   :  { %600 = vmatmul.msk.f32.gmra.mxu2 %vm83_vm0, %v61_v61 }
  0x7c   :  { %616 = vmatmul.msk.f32.gmra.mxu3 %vm83_vm0, %v77_v62 }
  0x7d   :  { %568 = vmatmul.msk.f32.gmra.mxu0 %vm83_vm0, %v29_v63 }
  0x7e   :  { %584 = vmatmul.msk.f32.gmra.mxu1 %vm83_vm0, %v45_v0 }
  0x82   :  { %v293_v2 = vpop.f32.mrf.mxu0 }
  0x83   :  { %v341_v3 = vpop.f32.mrf.mxu1  ;;  %v294_v4 = vadd.f32 %v903_v1, %v293_v2 }
  0x84   :  { %v342_v5 = vadd.f32 %v903_v1, %v341_v3 }
  0x85   :  { %485 = vst [vmem:[%s1164_s3] sm:$0xff] %v294_v4 }
  0x86   :  { %501 = vst [vmem:[%s1164_s3 + $0x80] sm:$0xff] %v342_v5  ;;  %v389_v6 = vpop.f32.mrf.mxu2 }
  0x87   :  { %v437_v7 = vpop.f32.mrf.mxu3  ;;  %v390_v8 = vadd.f32 %v903_v1, %v389_v6 }
  0x88   :  { %v438_v9 = vadd.f32 %v903_v1, %v437_v7 }
  0x89   :  { %517 = vst [vmem:[%s1164_s3 + $0x100] sm:$0xff] %v390_v8 }
  0x8a   :  { %533 = vst [vmem:[%s1164_s3 + $0x180] sm:$0xff] %v438_v9  ;;  %v296_v10 = vpop.f32.mrf.mxu0 }
  0x8b   :  { %v344_v11 = vpop.f32.mrf.mxu1  ;;  %v297_v12 = vadd.f32 %v903_v1, %v296_v10 }
  0x8c   :  { %v345_v13 = vadd.f32 %v903_v1, %v344_v11 }
  0x8d   :  { %486 = vst [vmem:[%s1164_s3 + $0x8] sm:$0xff] %v297_v12 }
  0x8e   :  { %502 = vst [vmem:[%s1164_s3 + $0x88] sm:$0xff] %v345_v13  ;;  %v392_v14 = vpop.f32.mrf.mxu2 }
  0x8f   :  { %v440_v15 = vpop.f32.mrf.mxu3  ;;  %v393_v16 = vadd.f32 %v903_v1, %v392_v14 }
  0x90   :  { %v441_v17 = vadd.f32 %v903_v1, %v440_v15 }
  0x91   :  { %518 = vst [vmem:[%s1164_s3 + $0x108] sm:$0xff] %v393_v16 }
  0x92   :  { %534 = vst [vmem:[%s1164_s3 + $0x188] sm:$0xff] %v441_v17  ;;  %v299_v18 = vpop.f32.mrf.mxu0 }
  0x93   :  { %v347_v19 = vpop.f32.mrf.mxu1  ;;  %v300_v20 = vadd.f32 %v903_v1, %v299_v18 }
  0x94   :  { %v348_v21 = vadd.f32 %v903_v1, %v347_v19 }
  0x95   :  { %487 = vst [vmem:[%s1164_s3 + $0x10] sm:$0xff] %v300_v20 }
  0x96   :  { %503 = vst [vmem:[%s1164_s3 + $0x90] sm:$0xff] %v348_v21  ;;  %v395_v22 = vpop.f32.mrf.mxu2 }
  0x97   :  { %v443_v23 = vpop.f32.mrf.mxu3  ;;  %v396_v24 = vadd.f32 %v903_v1, %v395_v22 }
  0x98   :  { %v444_v25 = vadd.f32 %v903_v1, %v443_v23 }
  0x99   :  { %519 = vst [vmem:[%s1164_s3 + $0x110] sm:$0xff] %v396_v24 }
  0x9a   :  { %535 = vst [vmem:[%s1164_s3 + $0x190] sm:$0xff] %v444_v25  ;;  %v302_v26 = vpop.f32.mrf.mxu0 }
  0x9b   :  { %v350_v27 = vpop.f32.mrf.mxu1  ;;  %v303_v28 = vadd.f32 %v903_v1, %v302_v26 }
  0x9c   :  { %v351_v29 = vadd.f32 %v903_v1, %v350_v27 }
  0x9d   :  { %488 = vst [vmem:[%s1164_s3 + $0x18] sm:$0xff] %v303_v28 }
  0x9e   :  { %504 = vst [vmem:[%s1164_s3 + $0x98] sm:$0xff] %v351_v29  ;;  %v398_v30 = vpop.f32.mrf.mxu2 }
  0x9f   :  { %v446_v31 = vpop.f32.mrf.mxu3  ;;  %v399_v32 = vadd.f32 %v903_v1, %v398_v30 }
  0xa0   :  { %v447_v33 = vadd.f32 %v903_v1, %v446_v31 }
  0xa1   :  { %520 = vst [vmem:[%s1164_s3 + $0x118] sm:$0xff] %v399_v32 }
  0xa2   :  { %536 = vst [vmem:[%s1164_s3 + $0x198] sm:$0xff] %v447_v33  ;;  %v305_v34 = vpop.f32.mrf.mxu0 }
  0xa3   :  { %v353_v35 = vpop.f32.mrf.mxu1  ;;  %v306_v36 = vadd.f32 %v903_v1, %v305_v34 }
  0xa4   :  { %v354_v37 = vadd.f32 %v903_v1, %v353_v35 }
  0xa5   :  { %489 = vst [vmem:[%s1164_s3 + $0x20] sm:$0xff] %v306_v36 }
  0xa6   :  { %505 = vst [vmem:[%s1164_s3 + $0xa0] sm:$0xff] %v354_v37  ;;  %v401_v38 = vpop.f32.mrf.mxu2 }
  0xa7   :  { %v449_v39 = vpop.f32.mrf.mxu3  ;;  %v402_v40 = vadd.f32 %v903_v1, %v401_v38 }
  0xa8   :  { %v450_v41 = vadd.f32 %v903_v1, %v449_v39 }
  0xa9   :  { %521 = vst [vmem:[%s1164_s3 + $0x120] sm:$0xff] %v402_v40 }
  0xaa   :  { %537 = vst [vmem:[%s1164_s3 + $0x1a0] sm:$0xff] %v450_v41  ;;  %v308_v42 = vpop.f32.mrf.mxu0 }
  0xab   :  { %v356_v43 = vpop.f32.mrf.mxu1  ;;  %v309_v44 = vadd.f32 %v903_v1, %v308_v42 }
  0xac   :  { %v357_v45 = vadd.f32 %v903_v1, %v356_v43 }
  0xad   :  { %490 = vst [vmem:[%s1164_s3 + $0x28] sm:$0xff] %v309_v44 }
  0xae   :  { %506 = vst [vmem:[%s1164_s3 + $0xa8] sm:$0xff] %v357_v45  ;;  %v404_v46 = vpop.f32.mrf.mxu2 }
  0xaf   :  { %v452_v47 = vpop.f32.mrf.mxu3  ;;  %v405_v48 = vadd.f32 %v903_v1, %v404_v46 }
  0xb0   :  { %v453_v49 = vadd.f32 %v903_v1, %v452_v47 }
  0xb1   :  { %522 = vst [vmem:[%s1164_s3 + $0x128] sm:$0xff] %v405_v48 }
  0xb2   :  { %538 = vst [vmem:[%s1164_s3 + $0x1a8] sm:$0xff] %v453_v49  ;;  %v311_v50 = vpop.f32.mrf.mxu0 }
  0xb3   :  { %v359_v51 = vpop.f32.mrf.mxu1  ;;  %v312_v52 = vadd.f32 %v903_v1, %v311_v50 }
  0xb4   :  { %v360_v53 = vadd.f32 %v903_v1, %v359_v51 }
  0xb5   :  { %491 = vst [vmem:[%s1164_s3 + $0x30] sm:$0xff] %v312_v52 }
  0xb6   :  { %507 = vst [vmem:[%s1164_s3 + $0xb0] sm:$0xff] %v360_v53  ;;  %v407_v54 = vpop.f32.mrf.mxu2 }
  0xb7   :  { %v455_v55 = vpop.f32.mrf.mxu3  ;;  %v408_v56 = vadd.f32 %v903_v1, %v407_v54 }
  0xb8   :  { %v456_v57 = vadd.f32 %v903_v1, %v455_v55 }
  0xb9   :  { %523 = vst [vmem:[%s1164_s3 + $0x130] sm:$0xff] %v408_v56 }
  0xba   :  { %539 = vst [vmem:[%s1164_s3 + $0x1b0] sm:$0xff] %v456_v57  ;;  %v314_v58 = vpop.f32.mrf.mxu0 }
  0xbb   :  { %v362_v59 = vpop.f32.mrf.mxu1  ;;  %v315_v60 = vadd.f32 %v903_v1, %v314_v58 }
  0xbc   :  { %v363_v61 = vadd.f32 %v903_v1, %v362_v59 }
  0xbd   :  { %492 = vst [vmem:[%s1164_s3 + $0x38] sm:$0xff] %v315_v60 }
  0xbe   :  { %508 = vst [vmem:[%s1164_s3 + $0xb8] sm:$0xff] %v363_v61  ;;  %v410_v62 = vpop.f32.mrf.mxu2 }
  0xbf   :  { %v458_v63 = vpop.f32.mrf.mxu3  ;;  %v411_v0 = vadd.f32 %v903_v1, %v410_v62 }
  0xc0   :  { %v459_v2 = vadd.f32 %v903_v1, %v458_v63 }
  0xc1   :  { %524 = vst [vmem:[%s1164_s3 + $0x138] sm:$0xff] %v411_v0 }
  0xc2   :  { %540 = vst [vmem:[%s1164_s3 + $0x1b8] sm:$0xff] %v459_v2  ;;  %v317_v3 = vpop.f32.mrf.mxu0 }
  0xc3   :  { %v365_v4 = vpop.f32.mrf.mxu1  ;;  %v318_v5 = vadd.f32 %v903_v1, %v317_v3 }
  0xc4   :  { %v366_v6 = vadd.f32 %v903_v1, %v365_v4 }
  0xc5   :  { %493 = vst [vmem:[%s1164_s3 + $0x40] sm:$0xff] %v318_v5 }
  0xc6   :  { %509 = vst [vmem:[%s1164_s3 + $0xc0] sm:$0xff] %v366_v6  ;;  %v413_v7 = vpop.f32.mrf.mxu2 }
  0xc7   :  { %v461_v8 = vpop.f32.mrf.mxu3  ;;  %v414_v9 = vadd.f32 %v903_v1, %v413_v7 }
  0xc8   :  { %v462_v10 = vadd.f32 %v903_v1, %v461_v8 }
  0xc9   :  { %525 = vst [vmem:[%s1164_s3 + $0x140] sm:$0xff] %v414_v9 }
  0xca   :  { %541 = vst [vmem:[%s1164_s3 + $0x1c0] sm:$0xff] %v462_v10  ;;  %v320_v11 = vpop.f32.mrf.mxu0 }
  0xcb   :  { %v368_v12 = vpop.f32.mrf.mxu1  ;;  %v321_v13 = vadd.f32 %v903_v1, %v320_v11 }
  0xcc   :  { %v369_v14 = vadd.f32 %v903_v1, %v368_v12 }
  0xcd   :  { %494 = vst [vmem:[%s1164_s3 + $0x48] sm:$0xff] %v321_v13 }
  0xce   :  { %510 = vst [vmem:[%s1164_s3 + $0xc8] sm:$0xff] %v369_v14  ;;  %v416_v15 = vpop.f32.mrf.mxu2 }
  0xcf   :  { %v464_v16 = vpop.f32.mrf.mxu3  ;;  %v417_v17 = vadd.f32 %v903_v1, %v416_v15 }
  0xd0   :  { %v465_v18 = vadd.f32 %v903_v1, %v464_v16 }
  0xd1   :  { %526 = vst [vmem:[%s1164_s3 + $0x148] sm:$0xff] %v417_v17 }
  0xd2   :  { %542 = vst [vmem:[%s1164_s3 + $0x1c8] sm:$0xff] %v465_v18  ;;  %v323_v19 = vpop.f32.mrf.mxu0 }
  0xd3   :  { %v371_v20 = vpop.f32.mrf.mxu1  ;;  %v324_v21 = vadd.f32 %v903_v1, %v323_v19 }
  0xd4   :  { %v372_v22 = vadd.f32 %v903_v1, %v371_v20 }
  0xd5   :  { %495 = vst [vmem:[%s1164_s3 + $0x50] sm:$0xff] %v324_v21 }
  0xd6   :  { %511 = vst [vmem:[%s1164_s3 + $0xd0] sm:$0xff] %v372_v22  ;;  %v419_v23 = vpop.f32.mrf.mxu2 }
  0xd7   :  { %v467_v24 = vpop.f32.mrf.mxu3  ;;  %v420_v25 = vadd.f32 %v903_v1, %v419_v23 }
  0xd8   :  { %v468_v26 = vadd.f32 %v903_v1, %v467_v24 }
  0xd9   :  { %527 = vst [vmem:[%s1164_s3 + $0x150] sm:$0xff] %v420_v25 }
  0xda   :  { %543 = vst [vmem:[%s1164_s3 + $0x1d0] sm:$0xff] %v468_v26  ;;  %v326_v27 = vpop.f32.mrf.mxu0 }
  0xdb   :  { %v374_v28 = vpop.f32.mrf.mxu1  ;;  %v327_v29 = vadd.f32 %v903_v1, %v326_v27 }
  0xdc   :  { %v375_v30 = vadd.f32 %v903_v1, %v374_v28 }
  0xdd   :  { %496 = vst [vmem:[%s1164_s3 + $0x58] sm:$0xff] %v327_v29 }
  0xde   :  { %512 = vst [vmem:[%s1164_s3 + $0xd8] sm:$0xff] %v375_v30  ;;  %v422_v31 = vpop.f32.mrf.mxu2 }
  0xdf   :  { %v470_v32 = vpop.f32.mrf.mxu3  ;;  %v423_v33 = vadd.f32 %v903_v1, %v422_v31 }
  0xe0   :  { %v471_v34 = vadd.f32 %v903_v1, %v470_v32 }
  0xe1   :  { %528 = vst [vmem:[%s1164_s3 + $0x158] sm:$0xff] %v423_v33 }
  0xe2   :  { %544 = vst [vmem:[%s1164_s3 + $0x1d8] sm:$0xff] %v471_v34  ;;  %v329_v35 = vpop.f32.mrf.mxu0 }
  0xe3   :  { %v377_v36 = vpop.f32.mrf.mxu1  ;;  %v330_v37 = vadd.f32 %v903_v1, %v329_v35 }
  0xe4   :  { %v378_v38 = vadd.f32 %v903_v1, %v377_v36 }
  0xe5   :  { %497 = vst [vmem:[%s1164_s3 + $0x60] sm:$0xff] %v330_v37 }
  0xe6   :  { %513 = vst [vmem:[%s1164_s3 + $0xe0] sm:$0xff] %v378_v38  ;;  %v425_v39 = vpop.f32.mrf.mxu2 }
  0xe7   :  { %v473_v40 = vpop.f32.mrf.mxu3  ;;  %v426_v41 = vadd.f32 %v903_v1, %v425_v39 }
  0xe8   :  { %v474_v42 = vadd.f32 %v903_v1, %v473_v40 }
  0xe9   :  { %529 = vst [vmem:[%s1164_s3 + $0x160] sm:$0xff] %v426_v41 }
  0xea   :  { %545 = vst [vmem:[%s1164_s3 + $0x1e0] sm:$0xff] %v474_v42  ;;  %v332_v43 = vpop.f32.mrf.mxu0 }
  0xeb   :  { %v380_v44 = vpop.f32.mrf.mxu1  ;;  %v333_v45 = vadd.f32 %v903_v1, %v332_v43 }
  0xec   :  { %v381_v46 = vadd.f32 %v903_v1, %v380_v44 }
  0xed   :  { %498 = vst [vmem:[%s1164_s3 + $0x68] sm:$0xff] %v333_v45 }
  0xee   :  { %514 = vst [vmem:[%s1164_s3 + $0xe8] sm:$0xff] %v381_v46  ;;  %v428_v47 = vpop.f32.mrf.mxu2 }
  0xef   :  { %v476_v48 = vpop.f32.mrf.mxu3  ;;  %v429_v49 = vadd.f32 %v903_v1, %v428_v47 }
  0xf0   :  { %v477_v50 = vadd.f32 %v903_v1, %v476_v48 }
  0xf1   :  { %530 = vst [vmem:[%s1164_s3 + $0x168] sm:$0xff] %v429_v49 }
  0xf2   :  { %546 = vst [vmem:[%s1164_s3 + $0x1e8] sm:$0xff] %v477_v50  ;;  %v335_v51 = vpop.f32.mrf.mxu0 }
  0xf3   :  { %v383_v52 = vpop.f32.mrf.mxu1  ;;  %v336_v53 = vadd.f32 %v903_v1, %v335_v51 }
  0xf4   :  { %v384_v54 = vadd.f32 %v903_v1, %v383_v52 }
  0xf5   :  { %499 = vst [vmem:[%s1164_s3 + $0x70] sm:$0xff] %v336_v53 }
  0xf6   :  { %515 = vst [vmem:[%s1164_s3 + $0xf0] sm:$0xff] %v384_v54  ;;  %v431_v55 = vpop.f32.mrf.mxu2 }
  0xf7   :  { %v479_v56 = vpop.f32.mrf.mxu3  ;;  %v432_v57 = vadd.f32 %v903_v1, %v431_v55 }
  0xf8   :  { %v480_v58 = vadd.f32 %v903_v1, %v479_v56 }
  0xf9   :  { %531 = vst [vmem:[%s1164_s3 + $0x170] sm:$0xff] %v432_v57 }
  0xfa   :  { %547 = vst [vmem:[%s1164_s3 + $0x1f0] sm:$0xff] %v480_v58  ;;  %v338_v59 = vpop.f32.mrf.mxu0 }
  0xfb   :  { %v386_v60 = vpop.f32.mrf.mxu1  ;;  %v339_v61 = vadd.f32 %v903_v1, %v338_v59 }
  0xfc   :  { %v387_v62 = vadd.f32 %v903_v1, %v386_v60 }
  0xfd   :  { %500 = vst [vmem:[%s1164_s3 + $0x78] sm:$0xff] %v339_v61 }
  0xfe   :  { %516 = vst [vmem:[%s1164_s3 + $0xf8] sm:$0xff] %v387_v62  ;;  %v434_v63 = vpop.f32.mrf.mxu2 }
  0xff   :  { %v482_v0 = vpop.f32.mrf.mxu3  ;;  %v435_v2 = vadd.f32 %v903_v1, %v434_v63 }
 0x100   :  { %v483_v3 = vadd.f32 %v903_v1, %v482_v0 }
 0x101   :  { %532 = vst [vmem:[%s1164_s3 + $0x178] sm:$0xff] %v435_v2 }
 0x102   :  { %548 = vst [vmem:[%s1164_s3 + $0x1f8] sm:$0xff] %v483_v3 }

</bundles_post_ra>
